<compile_context>
chip_gen: v5e
topology: v5e:2x2
jax: 0.10.0
libtpu: 0.0.40
codegen_flags: <defaults>
</compile_context>

<pallas_src>
import functools

import jax
import jax.numpy as jnp
from jax.experimental import pallas as pl
from jax.experimental.pallas import tpu as pltpu


def _kl_loss_tile_kernel(student_ref, teacher_ref, partial_ref, *,
                         inv_t, total_batch, tile_rows, need_mask):
    # Cast in VMEM (inputs may be bf16 in HBM); scale by 1/T via a multiply.
    s = student_ref[...].astype(jnp.float32) * inv_t
    t = teacher_ref[...].astype(jnp.float32) * inv_t

    if need_mask:
        # Rows past the true batch size come from a padded (garbage) block.
        row0 = pl.program_id(0) * tile_rows
        row_ids = jax.lax.broadcasted_iota(jnp.int32, (tile_rows, 1), 0)
        valid = (row0 + row_ids) < total_batch
        s = jnp.where(valid, s, 0.0)
        t = jnp.where(valid, t, 0.0)

    # log_softmax(student / T) along the class (lane) axis.
    s_shift = s - jnp.max(s, axis=1, keepdims=True)
    log_p = s_shift - jnp.log(jnp.sum(jnp.exp(s_shift), axis=1, keepdims=True))

    # softmax(teacher / T) + 1e-7 (epsilon before the log, matching PyTorch).
    t_shift = t - jnp.max(t, axis=1, keepdims=True)
    t_exp = jnp.exp(t_shift)
    inv_sum = pl.reciprocal(jnp.sum(t_exp, axis=1, keepdims=True), approx=False)
    q = t_exp * inv_sum + 1e-7

    kl = q * (jnp.log(q) - log_p)
    row_kl = jnp.sum(kl, axis=1, keepdims=True)
    if need_mask:
        row_kl = jnp.where(valid, row_kl, 0.0)

    tile_sum = jnp.sum(row_kl)
    # Lane-dense (unmasked) store of the per-tile partial sum.
    partial_ref[...] = jnp.full((1, 8, 128), tile_sum, dtype=jnp.float32)


def _choose_block_rows(batch, num_classes, itemsize,
                       budget_bytes=12 * 1024 * 1024):
    """Largest batch tile s.t. 2 inputs x 2 pipeline buffers fit the budget."""
    tb = budget_bytes // (4 * num_classes * itemsize)
    tb = max(8, (tb // 8) * 8)          # keep sublane-aligned when tiling
    if tb >= batch:
        return batch                     # single tile covering the full batch
    return tb


def kl_loss(student_logits, teacher_logits, temperature=1.0, block_rows=None):
    """Pallas implementation of KL_Loss.forward. Inputs: [B, C] logits."""
    B, C = student_logits.shape
    assert teacher_logits.shape == (B, C)
    T = float(temperature)
    itemsize = jnp.dtype(student_logits.dtype).itemsize

    if block_rows is None:
        tb = _choose_block_rows(B, C, itemsize)
    else:
        tb = int(block_rows)
        if tb < B:
            tb = max(8, (tb // 8) * 8)   # sublane alignment when actually tiling
        else:
            tb = B
    num_tiles = pl.cdiv(B, tb)
    need_mask = (B % tb) != 0

    # Explicit scoped-VMEM limit: double-buffered input tiles + headroom.
    dbl_buf_bytes = 4 * tb * C * itemsize        # 2 inputs x 2 buffers
    vmem_limit = min(int(1.5 * dbl_buf_bytes) + (2 << 20), 32 * 1024 * 1024)
    vmem_limit = max(vmem_limit, 8 * 1024 * 1024)

    kernel = functools.partial(
        _kl_loss_tile_kernel,
        inv_t=1.0 / T,
        total_batch=B,
        tile_rows=tb,
        need_mask=need_mask,
    )

    # TODO(synk): for tiny class counts (C << 128) a lane-dense repack
    # (e.g. [B, C] -> [B/4, 4*C] style packing) would recover the 4x lane
    # under-utilization; skipped since realistic distillation C >= 128.
    partials = pl.pallas_call(
        kernel,
        out_shape=jax.ShapeDtypeStruct((num_tiles, 8, 128), jnp.float32),
        grid=(num_tiles,),
        in_specs=[
            pl.BlockSpec((tb, C), lambda i: (i, 0)),
            pl.BlockSpec((tb, C), lambda i: (i, 0)),
        ],
        out_specs=pl.BlockSpec((1, 8, 128), lambda i: (i, 0, 0)),
        compiler_params=pltpu.CompilerParams(
            dimension_semantics=("parallel",),
            vmem_limit_bytes=vmem_limit,
        ),
    )(student_logits, teacher_logits)

    # Final reduction + T^2 / B normalization in the wrapper (true batch size).
    return (T * T) * jnp.sum(partials[:, 0, 0]) / B


def _reference_kl_loss(student, teacher, temperature=1.0):
    T = float(temperature)
    s = student.astype(jnp.float32) / T
    t = teacher.astype(jnp.float32) / T
    log_p = jax.nn.log_softmax(s, axis=1)
    q = jax.nn.softmax(t, axis=1) + 1e-7
    kl = q * (jnp.log(q) - log_p)
    return T * T * jnp.sum(kl) / student.shape[0]


if __name__ == "__main__":
    key = jax.random.PRNGKey(0)
    k1, k2, k3, k4 = jax.random.split(key, 4)
    temperature = 3.0

    # Case 1: small single-tile case (8 samples, 32 classes), f32 inputs.
    B1, C1 = 8, 32
    s1 = jax.random.normal(k1, (B1, C1), dtype=jnp.float32)
    t1 = jax.random.normal(k2, (B1, C1), dtype=jnp.float32)
    out1 = jax.block_until_ready(kl_loss(s1, t1, temperature))
    ref1 = _reference_kl_loss(s1, t1, temperature)
    assert jnp.allclose(out1, ref1, rtol=1e-5, atol=1e-6), (out1, ref1)

    # Case 2: batch not divisible by the block size (exercises the grid,
    # double-buffered pipeline and ragged-tile masking) with bf16 inputs
    # (exercises the reduced-HBM-traffic path).
    B2, C2 = 20, 128
    s2 = jax.random.normal(k3, (B2, C2), dtype=jnp.float32).astype(jnp.bfloat16)
    t2 = jax.random.normal(k4, (B2, C2), dtype=jnp.float32).astype(jnp.bfloat16)
    out2 = jax.block_until_ready(kl_loss(s2, t2, temperature, block_rows=8))
    ref2 = _reference_kl_loss(s2, t2, temperature)
    assert jnp.allclose(out2, ref2, rtol=1e-4, atol=1e-5), (out2, ref2)

    print("KERNEL_OK")
</pallas_src>

<mosaic_0001>
module attributes {stable_mosaic.version = 11 : i64} {
  func.func @_kl_loss_tile_kernel(%arg0: i32, %arg1: memref<8x32xf32, #tpu.memory_space<vmem>>, %arg2: memref<8x32xf32, #tpu.memory_space<vmem>>, %arg3: memref<1x8x128xf32, #tpu.memory_space<vmem>>) attributes {dimension_semantics = [#tpu.dimension_semantics<parallel>], iteration_bounds = array<i64: 1>, scalar_prefetch = 0 : i64, scratch_operands = 0 : i64, tpu.core_type = #tpu.core_type<tc>, window_params = [{transform_indices = @transform_0, window_bounds = array<i64: 8, 32>}, {transform_indices = @transform_1, window_bounds = array<i64: 8, 32>}, {transform_indices = @transform_2, window_bounds = array<i64: 1, 8, 128>}]} {
    %c0 = arith.constant 0 : index
    %c0_0 = arith.constant 0 : index
    %0 = vector.load %arg1[%c0, %c0_0] : memref<8x32xf32, #tpu.memory_space<vmem>>, vector<8x32xf32>
    %cst = arith.constant 0.333333343 : f32
    %1 = vector.broadcast %cst : f32 to vector<8x32xf32>
    %2 = arith.mulf %0, %1 : vector<8x32xf32>
    %c0_1 = arith.constant 0 : index
    %c0_2 = arith.constant 0 : index
    %3 = vector.load %arg2[%c0_1, %c0_2] : memref<8x32xf32, #tpu.memory_space<vmem>>, vector<8x32xf32>
    %cst_3 = arith.constant 0.333333343 : f32
    %4 = vector.broadcast %cst_3 : f32 to vector<8x32xf32>
    %5 = arith.mulf %3, %4 : vector<8x32xf32>
    %cst_4 = arith.constant dense<0xFF800000> : vector<8xf32>
    %6 = vector.multi_reduction <maximumf>, %2, %cst_4 [1] : vector<8x32xf32> to vector<8xf32>
    %7 = vector.shape_cast %6 : vector<8xf32> to vector<8x1xf32>
    %8 = vector.broadcast %7 : vector<8x1xf32> to vector<8x32xf32>
    %9 = arith.subf %2, %8 : vector<8x32xf32>
    %10 = math.exp %9 : vector<8x32xf32>
    %cst_5 = arith.constant dense<0.000000e+00> : vector<8xf32>
    %11 = vector.multi_reduction <add>, %10, %cst_5 [1] : vector<8x32xf32> to vector<8xf32>
    %12 = vector.shape_cast %11 : vector<8xf32> to vector<8x1xf32>
    %13 = math.log %12 : vector<8x1xf32>
    %14 = vector.broadcast %13 : vector<8x1xf32> to vector<8x32xf32>
    %15 = arith.subf %9, %14 : vector<8x32xf32>
    %cst_6 = arith.constant dense<0xFF800000> : vector<8xf32>
    %16 = vector.multi_reduction <maximumf>, %5, %cst_6 [1] : vector<8x32xf32> to vector<8xf32>
    %17 = vector.shape_cast %16 : vector<8xf32> to vector<8x1xf32>
    %18 = vector.broadcast %17 : vector<8x1xf32> to vector<8x32xf32>
    %19 = arith.subf %5, %18 : vector<8x32xf32>
    %20 = math.exp %19 : vector<8x32xf32>
    %cst_7 = arith.constant dense<0.000000e+00> : vector<8xf32>
    %21 = vector.multi_reduction <add>, %20, %cst_7 [1] : vector<8x32xf32> to vector<8xf32>
    %22 = vector.shape_cast %21 : vector<8xf32> to vector<8x1xf32>
    %23 = tpu.reciprocal %22 : vector<8x1xf32> -> vector<8x1xf32>
    %24 = vector.broadcast %23 : vector<8x1xf32> to vector<8x32xf32>
    %25 = arith.mulf %20, %24 : vector<8x32xf32>
    %cst_8 = arith.constant 1.000000e-07 : f32
    %26 = vector.broadcast %cst_8 : f32 to vector<8x32xf32>
    %27 = arith.addf %25, %26 : vector<8x32xf32>
    %28 = math.log %27 : vector<8x32xf32>
    %29 = arith.subf %28, %15 : vector<8x32xf32>
    %30 = arith.mulf %27, %29 : vector<8x32xf32>
    %cst_9 = arith.constant dense<0.000000e+00> : vector<8xf32>
    %31 = vector.multi_reduction <add>, %30, %cst_9 [1] : vector<8x32xf32> to vector<8xf32>
    %32 = vector.shape_cast %31 : vector<8xf32> to vector<8x1xf32>
    %33 = vector.shape_cast %32 : vector<8x1xf32> to vector<1x8x1xf32>
    %cst_10 = arith.constant dense<0.000000e+00> : vector<1xf32>
    %34 = vector.multi_reduction <add>, %33, %cst_10 [1, 2] : vector<1x8x1xf32> to vector<1xf32>
    %35 = vector.shape_cast %34 : vector<1xf32> to vector<1x1x1xf32>
    %36 = vector.extract %35[0, 0, 0] : f32 from vector<1x1x1xf32>
    %37 = vector.broadcast %36 : f32 to vector<1x8x128xf32>
    %c0_11 = arith.constant 0 : index
    %c0_12 = arith.constant 0 : index
    %c0_13 = arith.constant 0 : index
    %38 = vector.load %arg3[%c0_11, %c0_12, %c0_13] : memref<1x8x128xf32, #tpu.memory_space<vmem>>, vector<1x8x128xf32>
    tpu.vector_store %arg3[%c0_11, %c0_12, %c0_13], %37 {strides = array<i32>} : memref<1x8x128xf32, #tpu.memory_space<vmem>>, vector<1x8x128xf32>,
    return
  }
  func.func @transform_0(%arg0: i32) -> (i32, i32) {
    %c0_i32 = arith.constant 0 : i32
    %c0_i32_0 = arith.constant 0 : i32
    return %arg0, %c0_i32 : i32, i32
  }
  func.func @transform_1(%arg0: i32) -> (i32, i32) {
    %c0_i32 = arith.constant 0 : i32
    %c0_i32_0 = arith.constant 0 : i32
    return %arg0, %c0_i32 : i32, i32
  }
  func.func @transform_2(%arg0: i32) -> (i32, i32, i32) {
    %c0_i32 = arith.constant 0 : i32
    %c0_i32_0 = arith.constant 0 : i32
    %c0_i32_1 = arith.constant 0 : i32
    return %arg0, %c0_i32, %c0_i32_0 : i32, i32, i32
  }
}

</mosaic_0001>

<bundles_post_ra>
// kernel: tpu_custom_call.1
= control target key start
LH: loop header
LB: loop body
LE: loop exit
PB: predicated region body
PF: predicated region fallthrough
CT: control target
= control target key end

     0   :  { %7 = vsyncpa [#allocation3], 0  ;;  %s245_s0 = inlined_call_operand.hbm [shape: f32[8,32], index: 0, kind: input, shape index: {}]   ;;  %s246_s1 = inlined_call_operand.hbm [shape: f32[8,32], index: 1, kind: input, shape index: {}]   ;;  %s247_s2 = inlined_call_operand.hbm [shape: f32[1,8,128], index: 2, kind: output, shape index: {}]  }
   0x1   :  { %8 = vsyncpa [#allocation6], 0 }
   0x2   :  { %9 = vsyncpa [#allocation4], 0  ;;  %s15_s11 = sshll.u32 %s245_s0, 4  ;;  %s213_s12 = smov [#allocation2]   ;;  %s16_s11 = int_to_ptr.hbm [resolvable:$true] %s15_s11 }
   0x3   :  { %s17_s13 = sshll.u32 %s213_s12, 4  ;;  %s26_s16 = sshll.u32 %s246_s1, 4  ;;  %s18_s13 = int_to_ptr.vmem [resolvable:$true] %s17_s13  ;;  %s27_s16 = int_to_ptr.hbm [resolvable:$true] %s26_s16 }
   0x4   :  { %20 = dma.hbm_to_vmem [thread:$0]  %s16_s11, 128, %s18_s13, [#allocation3]  }
   0x5   :  { %s214_s17 = smov [#allocation5]  }
   0x6   :  { %s28_s18 = sshll.u32 %s214_s17, 4  ;;  %s29_s18 = int_to_ptr.vmem [resolvable:$true] %s28_s18 }
   0x7   :  { %31 = dma.hbm_to_vmem [thread:$0]  %s27_s16, 128, %s29_s18, [#allocation6]  }
   0x8   :  { %207 = dma.done.wait [#allocation3], 128  }
   0x9   :  { %208 = vsyncadd [#allocation3], 4294967168 }
   0xa   :  { %209 = dma.done.wait [#allocation6], 128  }
   0xb   :  { %210 = vsyncadd [#allocation6], 4294967168  ;;  %v42_v0 = vld [vmem:[#allocation5] sm:$0xff]  ;;  %vm44_vm0 = vcmask 261120   ;;  %v40_v2 = vld [vmem:[#allocation2] sm:$0xff]  ;;  %vm89_vm5 = vcmask 7168  }
   0xc   :  { %v43_v1 = vmul.f32 0.33333334, %v42_v0  ;;  %v41_v4 = vmul.f32 0.33333334, %v40_v2  ;;  %s215_s0 = smov [#allocation7]   ;;  %s109_s21 = sshll.u32 %s247_s2, 4  ;;  %s110_s21 = int_to_ptr.hbm [resolvable:$true] %s109_s21 }
   0xd   :  { %s107_s1 = sshll.u32 %s215_s0, 4  ;;  %s108_s1 = int_to_ptr.vmem [resolvable:$true] %s107_s1 }
   0xe   :  { %v57_v3 = vsel %vm44_vm0, %v43_v1, -inf  ;;  %v45_v5 = vsel %vm44_vm0, %v41_v4, -inf }
   0xf   :  { %58 = vmax.xlane.f32.xlu0 %v57_v3 }
  0x17   :  { %46 = vmax.xlane.f32.xlu0 %v45_v5 }
  0x82   :  { %v59_v6 = vpop.xlane.xlu0 %58 }
  0x83   :  { %v60_v7 = vsub.f32 %v43_v1, %v59_v6 }
  0x85   :  { %v61_v8 = vmul.f32 1.442695, %v60_v7 }
  0x87   :  { %125 = vpow2.f32 %v61_v8 }
  0x8a   :  { %v47_v9 = vpop.xlane.xlu0 %46 }
  0x8b   :  { %v48_v10 = vsub.f32 %v41_v4, %v47_v9 }
  0x8d   :  { %v126_v11 = vpop.eup %125  ;;  %v49_v12 = vmul.f32 1.442695, %v48_v10 }
  0x8e   :  { %v63_v13 = vsel %vm44_vm0, %v126_v11, 0.0 }
  0x8f   :  { %127 = vpow2.f32 %v49_v12  ;;  %64 = vadd.xlane.f32.xlu1 %v63_v13 }
  0x95   :  { %v128_v14 = vpop.eup %127 }
  0x96   :  { %v51_v15 = vsel %vm44_vm0, %v128_v14, 0.0 }
  0x97   :  { %52 = vadd.xlane.f32.xlu1 %v51_v15 }
 0x102   :  { %v65_v16 = vpop.xlane.xlu1 %64 }
 0x103   :  { %129 = vrcp.f32 %v65_v16  ;;  %v77_v20 = vand.u32 2147483648, %v65_v16  ;;  %v75_v22 = vand.u32 2147483647, %v65_v16  ;;  %vm71_vm2 = vweird.f32 %v65_v16 }
 0x105   :  { %v78_v25 = vor.u32 1.1754944e-38, %v77_v20  ;;  %vm76_vm4 = vcmp.eq.f32.partialorder %v75_v22, 8.507059e+37 }
 0x109   :  { %v130_v17 = vpop.eup %129 }
 0x10a   :  { %v67_v18 = vmul.f32 %v130_v17, %v65_v16  ;;  %vm72_vm1 = vweird.f32 %v130_v17  ;;  %v53_v23 = vpop.xlane.xlu1 %52 }
 0x10b   :  { %vm73_vm3 = vmor %vm71_vm2, %vm72_vm1  ;;  %131 = vlog2.f32 %v53_v23 }
 0x10c   :  { %v68_v19 = vsub.f32 1.0, %v67_v18 }
 0x10e   :  { %v69_v21 = vmul.f32 %v130_v17, %v68_v19 }
 0x110   :  { %v70_v24 = vadd.f32 %v130_v17, %v69_v21 }
 0x111   :  { %v132_v30 = vpop.eup %131 }
 0x112   :  { %v74_v26 = vsel %vm73_vm3, %v130_v17, %v70_v24  ;;  %v55_v31 = vmul.f32 0.6931472, %v132_v30 }
 0x113   :  { %v79_v27 = vsel %vm76_vm4, %v78_v25, %v74_v26 }
 0x114   :  { %v80_v28 = vmul.f32 %v126_v11, %v79_v27  ;;  %v56_v33 = vsub.f32 %v48_v10, %v55_v31 }
 0x116   :  { %v81_v29 = vadd.f32 1e-07, %v80_v28 }
 0x118   :  { %133 = vlog2.f32 %v81_v29 }
 0x11e   :  { %v134_v32 = vpop.eup %133 }
 0x11f   :  { %v83_v34 = vmul.f32 0.6931472, %v134_v32 }
 0x121   :  { %v84_v35 = vsub.f32 %v83_v34, %v56_v33 }
 0x123   :  { %v85_v36 = vmul.f32 %v84_v35, %v81_v29 }
 0x125   :  { %v86_v37 = vsel %vm44_vm0, %v85_v36, 0.0 }
 0x126   :  { %87 = vadd.xlane.f32.xlu2 %v86_v37 }
 0x199   :  { %v88_v38 = vpop.xlane.xlu2 %87 }
 0x19a   :  { %v90_v39 = vsel %vm89_vm5, %v88_v38, 0.0 }
 0x19b   :  { %91 = vadd.xlane.f32.xlu2 %v90_v39 }
 0x20e   :  { %v92_v40 = vpop.xlane.xlu2 %91 }
 0x20f   :  { %v93_v41 = vrot.slane %v92_v40, 4 }
 0x211   :  { %v94_v42 = vadd.f32 %v93_v41, %v92_v40 }
 0x213   :  { %v95_v43 = vrot.slane %v94_v42, 2 }
 0x215   :  { %v96_v44 = vadd.f32 %v95_v43, %v94_v42 }
 0x217   :  { %v97_v45 = vrot.slane %v96_v44, 1 }
 0x219   :  { %v98_v46 = vadd.f32 %v97_v45, %v96_v44 }
 0x21b   :  { %120 = vpush %v98_v46 }
 0x24c   :  { %s121_s22 = spop %120 }
 0x24d   :  { %v100_v47 = vstv %s121_s22 }
 0x24e   :  { %101 = vst [vmem:[#allocation7] sm:$0xff] %v100_v47 }
 0x24f   :  { %112 = dma.vmem_to_hbm [thread:$0]  %s108_s1, 128, %s110_s21, [#allocation4]  }
 0x250   :  { %211 = dma.done.wait [#allocation4], 128  }
 0x251   :  { %212 = vsyncadd [#allocation4], 4294967168 }
 0x252   :  { %117 = vsyncpa [#allocation3], 1 }
 0x253   :  { %118 = vsyncpa [#allocation6], 1 }
 0x254   :  { %119 = vsyncpa [#allocation4], 1 }

</bundles_post_ra>
